<compile_context>
chip_gen: v5e
topology: v5e:2x2
jax: 0.10.0
libtpu: 0.0.40
codegen_flags: <defaults>
</compile_context>

<pallas_src>
import functools

import jax
import jax.numpy as jnp
from jax import lax
from jax.experimental import pallas as pl
from jax.experimental.pallas import tpu as pltpu


def _round_up(x, m):
    return ((x + m - 1) // m) * m


def _cdiv(a, b):
    return -(-a // b)


def _tpu_vmem_bytes():
    """Physical VMEM per TensorCore; conservative (v7x) fallback if unknown."""
    try:
        info = pltpu.get_tpu_info()
        v = int(getattr(info, "vmem_capacity_bytes", 0))
        if v >= (16 << 20):
            return v
    except Exception:
        pass
    return 64 << 20


def _vmem_tile_bytes(eb, tm, tn, tk, in_isz, out_isz, with_acc):
    """Conservative VMEM footprint: double-buffered I/O blocks (+ f32 accumulator)."""
    ru8 = lambda v: _round_up(v, 8)
    ru128 = lambda v: _round_up(v, 128)
    x_b = eb * ru8(tm) * ru128(tk) * in_isz
    w_b = eb * ru8(tn) * ru128(tk) * in_isz
    b_b = eb * 8 * ru128(tn) * in_isz
    o_b = eb * ru8(tm) * ru128(tn) * out_isz
    total = 2 * (x_b + w_b + b_b + o_b)          # BlockSpec blocks are double-buffered
    if with_acc:
        total += eb * ru8(tm) * ru128(tn) * 4    # f32 accumulator scratch
    return total


def _dim_candidates(dim, align, caps):
    """Legal tile sizes for one dim: multiples of `align` <= dim, plus the full dim."""
    cands = set()
    if dim <= max(caps):
        cands.add(dim)                           # block == full array dim is always legal
    for c in caps:
        v = min(c, dim)
        v -= v % align
        if v > 0:
            cands.add(v)
    if not cands:
        cands.add(dim)
    return sorted(cands, reverse=True)


def _auto_tiles(B, N, K, in_isz, out_isz, budget):
    tm_c = _dim_candidates(B, 8, (512, 256, 128, 64, 32, 16, 8))
    tn_c = _dim_candidates(N, 128, (1024, 512, 256, 128))
    tk_c = _dim_candidates(K, 128, (4096, 2048, 1024, 512, 256, 128))
    # Prefer the full-K (weight-resident) configuration: single K step, no
    # accumulator round trips, weight streamed once per ensemble member.
    if K in tk_c:
        for tn in tn_c:
            for tm in tm_c:
                if _vmem_tile_bytes(1, tm, tn, K, in_isz, out_isz, False) <= budget:
                    return tm, tn, K
    # Tiled-K fallback: largest tk first (fewer acc round trips), then tn, then tm.
    for tk in tk_c:
        for tn in tn_c:
            for tm in tm_c:
                if _vmem_tile_bytes(1, tm, tn, tk, in_isz, out_isz, True) <= budget:
                    return tm, tn, tk
    return tm_c[-1], tn_c[-1], tk_c[-1]


# ----------------------------------------------------------------------------- kernels


def _bl_kernel_full_k(x_ref, w_ref, b_ref, o_ref, *, eb, compute_dtype):
    """Full-K path: no reduction grid axis, no accumulator, bias fused into the store.

    Blocks: x (eb, tm, K), w (eb, tn, K), b (eb, 1, tn), o (eb, tm, tn).
    """
    for e in range(eb):                      # static unroll over packed ensemble members
        x_t = x_ref[e]
        w_t = w_ref[e]
        if compute_dtype is not None:
            x_t = x_t.astype(compute_dtype)
            w_t = w_t.astype(compute_dtype)
        p = lax.dot_general(
            x_t, w_t,
            dimension_numbers=(((1,), (1,)), ((), ())),   # contract on K, no transpose
            preferred_element_type=jnp.float32)
        o_ref[e] = (p + b_ref[e].astype(jnp.float32)).astype(o_ref.dtype)


def _bl_kernel_tiled_k(x_ref, w_ref, b_ref, o_ref, acc_ref, *, k_total, tk, compute_dtype):
    """Tiled-K path: grid axis 3 is the K reduction (marked 'arbitrary')."""
    k = pl.program_id(3)

    x_t = x_ref[0]
    w_t = w_ref[0]
    if k_total % tk != 0:
        # The edge K block reads past the array (garbage lanes); zero them so no
        # wrapper-side zero-padding pass over HBM is needed.
        rem = k_total - k * tk
        keep = lax.broadcasted_iota(jnp.int32, (1, tk), 1) < rem
        x_t = jnp.where(keep, x_t, 0.0)
        w_t = jnp.where(keep, w_t, 0.0)
    if compute_dtype is not None:
        x_t = x_t.astype(compute_dtype)
        w_t = w_t.astype(compute_dtype)

    p = lax.dot_general(
        x_t, w_t,
        dimension_numbers=(((1,), (1,)), ((), ())),
        preferred_element_type=jnp.float32)

    @pl.when(k == 0)
    def _():
        # Initialize with the first partial product + bias: no zero-fill pass,
        # and the epilogue bias add is folded away.
        acc_ref[...] = p + b_ref[0].astype(jnp.float32)

    @pl.when(k > 0)
    def _():
        acc_ref[...] += p

    @pl.when(k == pl.num_programs(3) - 1)
    def _():
        o_ref[0] = acc_ref[...].astype(o_ref.dtype)


# ----------------------------------------------------------------------------- wrapper


def batched_linear(x, weight, bias, *, tm=None, tn=None, tk=None, compute_dtype=None):
    """x: (E, B, K), weight: (E, N, K), bias: (E, N) -> (E, B, N).

    Equivalent to torch.bmm(input, weight.transpose(1, 2)) + bias.unsqueeze(1).
    Pass all of tm/tn/tk to override the automatic tile selection.
    """
    E, B, K = x.shape
    Ew, N, Kw = weight.shape
    assert Ew == E and Kw == K
    assert bias.shape == (E, N)
    out_dtype = x.dtype

    in_isz = jnp.dtype(x.dtype).itemsize
    out_isz = jnp.dtype(out_dtype).itemsize

    vmem_phys = _tpu_vmem_bytes()
    tile_budget = vmem_phys // 2                     # headroom for Mosaic internals

    if tm is None and tn is None and tk is None:
        tm, tn, tk = _auto_tiles(B, N, K, in_isz, out_isz, tile_budget)
    else:
        assert tm is not None and tn is not None and tk is not None, \
            "provide all of tm, tn, tk or none"
        assert tm <= B and (tm % 8 == 0 or tm == B)
        assert tn <= N and (tn % 128 == 0 or tn == N)
        assert tk <= K and (tk % 128 == 0 or tk == K)

    full_k = (tk == K)
    b_blocks = _cdiv(B, tm)
    n_blocks = _cdiv(N, tn)
    k_blocks = 1 if full_k else _cdiv(K, tk)

    # Pack several ensemble members per grid step when each member is a single
    # (i, j) tile with un-split K (fixes the tiny-problem overhead path).
    eb = 1
    if full_k and b_blocks == 1 and n_blocks == 1:
        for d in range(min(E, 16), 0, -1):
            if E % d == 0 and _vmem_tile_bytes(
                    d, tm, tn, tk, in_isz, out_isz, False) <= tile_budget:
                eb = d
                break
    e_blocks = E // eb

    weight_resident = full_k and n_blocks == 1
    # v7x dual-TC: lead with the batch-tile axis when it offers better core balance
    # than E, but never at the cost of per-member weight residency (HBM win dominates).
    lead_batch = (b_blocks > e_blocks) and (e_blocks == 1 or not weight_resident)
    if lead_batch:
        em = lambda a, b: b            # ensemble block index
        im = lambda a, b: a            # batch-tile block index
        lead = (b_blocks, e_blocks)
    else:
        em = lambda a, b: a
        im = lambda a, b: b
        lead = (e_blocks, b_blocks)

    bias3 = bias.reshape(E, 1, N)

    if full_k:
        grid = lead + (n_blocks,)
        kernel = functools.partial(_bl_kernel_full_k, eb=eb, compute_dtype=compute_dtype)
        in_specs = [
            pl.BlockSpec((eb, tm, tk), lambda a, b, j: (em(a, b), im(a, b), 0)),
            pl.BlockSpec((eb, tn, tk), lambda a, b, j: (em(a, b), j, 0)),
            pl.BlockSpec((eb, 1, tn), lambda a, b, j: (em(a, b), 0, j)),
        ]
        out_specs = pl.BlockSpec((eb, tm, tn), lambda a, b, j: (em(a, b), im(a, b), j))
        scratch = []
        dims = ("parallel", "parallel", "parallel")
    else:
        grid = lead + (n_blocks, k_blocks)
        kernel = functools.partial(_bl_kernel_tiled_k, k_total=K, tk=tk,
                                   compute_dtype=compute_dtype)
        in_specs = [
            pl.BlockSpec((1, tm, tk), lambda a, b, j, k: (em(a, b), im(a, b), k)),
            pl.BlockSpec((1, tn, tk), lambda a, b, j, k: (em(a, b), j, k)),
            pl.BlockSpec((1, 1, tn), lambda a, b, j, k: (em(a, b), 0, j)),
        ]
        out_specs = pl.BlockSpec((1, tm, tn), lambda a, b, j, k: (em(a, b), im(a, b), j))
        scratch = [pltpu.VMEM((tm, tn), jnp.float32)]
        dims = ("parallel", "parallel", "parallel", "arbitrary")

    # Only raise the scoped-VMEM limit when the chosen tiles actually need it.
    needed = _vmem_tile_bytes(eb, tm, tn, tk, in_isz, out_isz, not full_k)
    vmem_limit = None
    if needed > (24 << 20):
        vmem_limit = int(min(vmem_phys * 0.85, needed + (16 << 20)))

    # Advisory cost estimate including operand re-streaming across output tiles.
    w_isz = jnp.dtype(weight.dtype).itemsize
    cost = pl.CostEstimate(
        flops=2 * E * B * N * K,
        transcendentals=0,
        bytes_accessed=int(
            x.size * in_isz * n_blocks
            + weight.size * w_isz * (1 if weight_resident else b_blocks)
            + bias3.size * jnp.dtype(bias3.dtype).itemsize
            + E * B * N * out_isz),
    )

    return pl.pallas_call(
        kernel,
        out_shape=jax.ShapeDtypeStruct((E, B, N), out_dtype),
        grid_spec=pltpu.PrefetchScalarGridSpec(
            num_scalar_prefetch=0,
            grid=grid,
            in_specs=in_specs,
            out_specs=out_specs,
            scratch_shapes=scratch,
        ),
        compiler_params=pltpu.CompilerParams(
            dimension_semantics=dims,
            vmem_limit_bytes=vmem_limit,
        ),
        cost_estimate=cost,
    )(x, weight, bias3)


# ----------------------------------------------------------------------------- helpers


def init_params(key, ensemble_size, in_features, out_features, dtype=jnp.float32):
    """Deterministic init mimicking nn.Linear.reset_parameters (uniform +-1/sqrt(fan_in))."""
    kw, kb = jax.random.split(key)
    bound = 1.0 / (in_features ** 0.5)
    weight = jax.random.uniform(
        kw, (ensemble_size, out_features, in_features),
        minval=-bound, maxval=bound, dtype=dtype)
    bias = jax.random.uniform(
        kb, (ensemble_size, out_features),
        minval=-bound, maxval=bound, dtype=dtype)
    return weight, bias


def _reference(x, weight, bias):
    return jnp.einsum("ebk,enk->ebn", x, weight) + bias[:, None, :]


if __name__ == "__main__":
    key = jax.random.PRNGKey(0)
    k1, k2, k3, k4 = jax.random.split(key, 4)

    # 1) Small ensemble matching typical BatchedLinear use: exercises the packed-E,
    #    full-K single-grid-step path (eb = E, no padding anywhere).
    E, B, K, N = 4, 8, 32, 32
    x = jax.random.normal(k1, (E, B, K), dtype=jnp.float32)
    w, b = init_params(k2, E, K, N)
    out = jax.block_until_ready(batched_linear(x, w, b))
    ref = _reference(x, w, b)
    assert out.shape == (E, B, N)
    assert jnp.allclose(out, ref, atol=1e-4, rtol=1e-4)

    # 2) Non-aligned, larger problem: full-K weight-resident path, no B/N/K padding
    #    and no output slicing.
    E2, B2, K2, N2 = 2, 200, 300, 160
    x2 = jax.random.normal(k3, (E2, B2, K2), dtype=jnp.float32)
    w2, b2 = init_params(k4, E2, K2, N2)
    out2 = jax.block_until_ready(batched_linear(x2, w2, b2))
    assert out2.shape == (E2, B2, N2)
    assert jnp.allclose(out2, _reference(x2, w2, b2), atol=1e-4, rtol=1e-4)

    # 3) Same problem forced onto the tiled-K path (explicit tiles): exercises the
    #    in-kernel K-tail masking, init-with-first-product accumulator, and the
    #    batch-leading grid reorder.
    out3 = jax.block_until_ready(batched_linear(x2, w2, b2, tm=64, tn=128, tk=128))
    assert jnp.allclose(out3, _reference(x2, w2, b2), atol=1e-4, rtol=1e-4)

    print("KERNEL_OK")
</pallas_src>

<mosaic_0001>
module attributes {stable_mosaic.version = 11 : i64} {
  func.func @_bl_kernel_full_k(%arg0: i32, %arg1: i32, %arg2: i32, %arg3: memref<4x8x32xf32, #tpu.memory_space<vmem>>, %arg4: memref<4x32x32xf32, #tpu.memory_space<vmem>>, %arg5: memref<4x1x32xf32, #tpu.memory_space<vmem>>, %arg6: memref<4x8x32xf32, #tpu.memory_space<vmem>>) attributes {dimension_semantics = [#tpu.dimension_semantics<parallel>, #tpu.dimension_semantics<parallel>, #tpu.dimension_semantics<parallel>], iteration_bounds = array<i64: 1, 1, 1>, scalar_prefetch = 0 : i64, scratch_operands = 0 : i64, tpu.core_type = #tpu.core_type<tc>, window_params = [{transform_indices = @transform_0, window_bounds = array<i64: 4, 8, 32>}, {transform_indices = @transform_1, window_bounds = array<i64: 4, 32, 32>}, {transform_indices = @transform_2, window_bounds = array<i64: 4, 1, 32>}, {transform_indices = @transform_3, window_bounds = array<i64: 4, 8, 32>}]} {
    %c0 = arith.constant 0 : index
    %c0_0 = arith.constant 0 : index
    %c0_1 = arith.constant 0 : index
    %0 = vector.load %arg3[%c0, %c0_0, %c0_1] : memref<4x8x32xf32, #tpu.memory_space<vmem>>, vector<1x8x32xf32>
    %1 = vector.shape_cast %0 : vector<1x8x32xf32> to vector<8x32xf32>
    %c0_2 = arith.constant 0 : index
    %c0_3 = arith.constant 0 : index
    %c0_4 = arith.constant 0 : index
    %2 = vector.load %arg4[%c0_2, %c0_3, %c0_4] : memref<4x32x32xf32, #tpu.memory_space<vmem>>, vector<1x32x32xf32>
    %3 = vector.shape_cast %2 : vector<1x32x32xf32> to vector<32x32xf32>
    %cst = arith.constant dense<0.000000e+00> : vector<8x32xf32>
    %4 = tpu.matmul %1, %3, %cst {dimension_numbers = #tpu.dot_dimension_numbers<[1], [1], [0], [0], [0, 0, 1, 0], [], []>} : vector<8x32xf32>, vector<32x32xf32>, vector<8x32xf32> -> vector<8x32xf32>
    %c0_5 = arith.constant 0 : index
    %c0_6 = arith.constant 0 : index
    %c0_7 = arith.constant 0 : index
    %5 = vector.load %arg5[%c0_5, %c0_6, %c0_7] : memref<4x1x32xf32, #tpu.memory_space<vmem>>, vector<1x1x32xf32>
    %6 = vector.shape_cast %5 : vector<1x1x32xf32> to vector<1x32xf32>
    %7 = vector.broadcast %6 : vector<1x32xf32> to vector<8x32xf32>
    %8 = arith.addf %4, %7 : vector<8x32xf32>
    %c0_8 = arith.constant 0 : index
    %c0_9 = arith.constant 0 : index
    %c0_10 = arith.constant 0 : index
    %9 = vector.load %arg6[%c0_8, %c0_9, %c0_10] : memref<4x8x32xf32, #tpu.memory_space<vmem>>, vector<1x8x32xf32>
    %10 = vector.shape_cast %9 : vector<1x8x32xf32> to vector<8x32xf32>
    %11 = vector.shape_cast %8 : vector<8x32xf32> to vector<1x8x32xf32>
    tpu.vector_store %arg6[%c0_8, %c0_9, %c0_10], %11 {strides = array<i32>} : memref<4x8x32xf32, #tpu.memory_space<vmem>>, vector<1x8x32xf32>,
    %c1 = arith.constant 1 : index
    %c0_11 = arith.constant 0 : index
    %c0_12 = arith.constant 0 : index
    %12 = vector.load %arg3[%c1, %c0_11, %c0_12] : memref<4x8x32xf32, #tpu.memory_space<vmem>>, vector<1x8x32xf32>
    %13 = vector.shape_cast %12 : vector<1x8x32xf32> to vector<8x32xf32>
    %c1_13 = arith.constant 1 : index
    %c0_14 = arith.constant 0 : index
    %c0_15 = arith.constant 0 : index
    %14 = vector.load %arg4[%c1_13, %c0_14, %c0_15] : memref<4x32x32xf32, #tpu.memory_space<vmem>>, vector<1x32x32xf32>
    %15 = vector.shape_cast %14 : vector<1x32x32xf32> to vector<32x32xf32>
    %cst_16 = arith.constant dense<0.000000e+00> : vector<8x32xf32>
    %16 = tpu.matmul %13, %15, %cst_16 {dimension_numbers = #tpu.dot_dimension_numbers<[1], [1], [0], [0], [0, 0, 1, 0], [], []>} : vector<8x32xf32>, vector<32x32xf32>, vector<8x32xf32> -> vector<8x32xf32>
    %c1_17 = arith.constant 1 : index
    %c0_18 = arith.constant 0 : index
    %c0_19 = arith.constant 0 : index
    %17 = vector.load %arg5[%c1_17, %c0_18, %c0_19] : memref<4x1x32xf32, #tpu.memory_space<vmem>>, vector<1x1x32xf32>
    %18 = vector.shape_cast %17 : vector<1x1x32xf32> to vector<1x32xf32>
    %19 = vector.broadcast %18 : vector<1x32xf32> to vector<8x32xf32>
    %20 = arith.addf %16, %19 : vector<8x32xf32>
    %c1_20 = arith.constant 1 : index
    %c0_21 = arith.constant 0 : index
    %c0_22 = arith.constant 0 : index
    %21 = vector.load %arg6[%c1_20, %c0_21, %c0_22] : memref<4x8x32xf32, #tpu.memory_space<vmem>>, vector<1x8x32xf32>
    %22 = vector.shape_cast %21 : vector<1x8x32xf32> to vector<8x32xf32>
    %23 = vector.shape_cast %20 : vector<8x32xf32> to vector<1x8x32xf32>
    tpu.vector_store %arg6[%c1_20, %c0_21, %c0_22], %23 {strides = array<i32>} : memref<4x8x32xf32, #tpu.memory_space<vmem>>, vector<1x8x32xf32>,
    %c2 = arith.constant 2 : index
    %c0_23 = arith.constant 0 : index
    %c0_24 = arith.constant 0 : index
    %24 = vector.load %arg3[%c2, %c0_23, %c0_24] : memref<4x8x32xf32, #tpu.memory_space<vmem>>, vector<1x8x32xf32>
    %25 = vector.shape_cast %24 : vector<1x8x32xf32> to vector<8x32xf32>
    %c2_25 = arith.constant 2 : index
    %c0_26 = arith.constant 0 : index
    %c0_27 = arith.constant 0 : index
    %26 = vector.load %arg4[%c2_25, %c0_26, %c0_27] : memref<4x32x32xf32, #tpu.memory_space<vmem>>, vector<1x32x32xf32>
    %27 = vector.shape_cast %26 : vector<1x32x32xf32> to vector<32x32xf32>
    %cst_28 = arith.constant dense<0.000000e+00> : vector<8x32xf32>
    %28 = tpu.matmul %25, %27, %cst_28 {dimension_numbers = #tpu.dot_dimension_numbers<[1], [1], [0], [0], [0, 0, 1, 0], [], []>} : vector<8x32xf32>, vector<32x32xf32>, vector<8x32xf32> -> vector<8x32xf32>
    %c2_29 = arith.constant 2 : index
    %c0_30 = arith.constant 0 : index
    %c0_31 = arith.constant 0 : index
    %29 = vector.load %arg5[%c2_29, %c0_30, %c0_31] : memref<4x1x32xf32, #tpu.memory_space<vmem>>, vector<1x1x32xf32>
    %30 = vector.shape_cast %29 : vector<1x1x32xf32> to vector<1x32xf32>
    %31 = vector.broadcast %30 : vector<1x32xf32> to vector<8x32xf32>
    %32 = arith.addf %28, %31 : vector<8x32xf32>
    %c2_32 = arith.constant 2 : index
    %c0_33 = arith.constant 0 : index
    %c0_34 = arith.constant 0 : index
    %33 = vector.load %arg6[%c2_32, %c0_33, %c0_34] : memref<4x8x32xf32, #tpu.memory_space<vmem>>, vector<1x8x32xf32>
    %34 = vector.shape_cast %33 : vector<1x8x32xf32> to vector<8x32xf32>
    %35 = vector.shape_cast %32 : vector<8x32xf32> to vector<1x8x32xf32>
    tpu.vector_store %arg6[%c2_32, %c0_33, %c0_34], %35 {strides = array<i32>} : memref<4x8x32xf32, #tpu.memory_space<vmem>>, vector<1x8x32xf32>,
    %c3 = arith.constant 3 : index
    %c0_35 = arith.constant 0 : index
    %c0_36 = arith.constant 0 : index
    %36 = vector.load %arg3[%c3, %c0_35, %c0_36] : memref<4x8x32xf32, #tpu.memory_space<vmem>>, vector<1x8x32xf32>
    %37 = vector.shape_cast %36 : vector<1x8x32xf32> to vector<8x32xf32>
    %c3_37 = arith.constant 3 : index
    %c0_38 = arith.constant 0 : index
    %c0_39 = arith.constant 0 : index
    %38 = vector.load %arg4[%c3_37, %c0_38, %c0_39] : memref<4x32x32xf32, #tpu.memory_space<vmem>>, vector<1x32x32xf32>
    %39 = vector.shape_cast %38 : vector<1x32x32xf32> to vector<32x32xf32>
    %cst_40 = arith.constant dense<0.000000e+00> : vector<8x32xf32>
    %40 = tpu.matmul %37, %39, %cst_40 {dimension_numbers = #tpu.dot_dimension_numbers<[1], [1], [0], [0], [0, 0, 1, 0], [], []>} : vector<8x32xf32>, vector<32x32xf32>, vector<8x32xf32> -> vector<8x32xf32>
    %c3_41 = arith.constant 3 : index
    %c0_42 = arith.constant 0 : index
    %c0_43 = arith.constant 0 : index
    %41 = vector.load %arg5[%c3_41, %c0_42, %c0_43] : memref<4x1x32xf32, #tpu.memory_space<vmem>>, vector<1x1x32xf32>
    %42 = vector.shape_cast %41 : vector<1x1x32xf32> to vector<1x32xf32>
    %43 = vector.broadcast %42 : vector<1x32xf32> to vector<8x32xf32>
    %44 = arith.addf %40, %43 : vector<8x32xf32>
    %c3_44 = arith.constant 3 : index
    %c0_45 = arith.constant 0 : index
    %c0_46 = arith.constant 0 : index
    %45 = vector.load %arg6[%c3_44, %c0_45, %c0_46] : memref<4x8x32xf32, #tpu.memory_space<vmem>>, vector<1x8x32xf32>
    %46 = vector.shape_cast %45 : vector<1x8x32xf32> to vector<8x32xf32>
    %47 = vector.shape_cast %44 : vector<8x32xf32> to vector<1x8x32xf32>
    tpu.vector_store %arg6[%c3_44, %c0_45, %c0_46], %47 {strides = array<i32>} : memref<4x8x32xf32, #tpu.memory_space<vmem>>, vector<1x8x32xf32>,
    return
  }
  func.func @transform_0(%arg0: i32, %arg1: i32, %arg2: i32) -> (i32, i32, i32) {
    %c0_i32 = arith.constant 0 : i32
    %c0_i32_0 = arith.constant 0 : i32
    return %arg0, %arg1, %c0_i32 : i32, i32, i32
  }
  func.func @transform_1(%arg0: i32, %arg1: i32, %arg2: i32) -> (i32, i32, i32) {
    %c0_i32 = arith.constant 0 : i32
    %c0_i32_0 = arith.constant 0 : i32
    return %arg0, %arg2, %c0_i32 : i32, i32, i32
  }
  func.func @transform_2(%arg0: i32, %arg1: i32, %arg2: i32) -> (i32, i32, i32) {
    %c0_i32 = arith.constant 0 : i32
    %c0_i32_0 = arith.constant 0 : i32
    return %arg0, %c0_i32, %arg2 : i32, i32, i32
  }
  func.func @transform_3(%arg0: i32, %arg1: i32, %arg2: i32) -> (i32, i32, i32) {
    %c0_i32 = arith.constant 0 : i32
    return %arg0, %arg1, %arg2 : i32, i32, i32
  }
}

</mosaic_0001>

<bundles_post_ra>
// kernel: tpu_custom_call.1
= control target key start
LH: loop header
LB: loop body
LE: loop exit
PB: predicated region body
PF: predicated region fallthrough
CT: control target
= control target key end

     0   :  { %8 = vsyncpa [#allocation3], 0  ;;  %s482_s0 = inlined_call_operand.hbm [shape: f32[4,8,32], index: 0, kind: input, shape index: {}]   ;;  %s483_s1 = inlined_call_operand.hbm [shape: f32[4,32,32], index: 1, kind: input, shape index: {}]   ;;  %s484_s2 = inlined_call_operand.hbm [shape: f32[4,1,32], index: 2, kind: input, shape index: {}]   ;;  %s485_s3 = inlined_call_operand.hbm [shape: f32[4,8,32], index: 3, kind: output, shape index: {}]  }
   0x1   :  { %9 = vsyncpa [#allocation6], 0 }
   0x2   :  { %10 = vsyncpa [#allocation4], 0  ;;  %s28_s14 = sshll.u32 %s483_s1, 4  ;;  %s409_s15 = smov [#allocation5]   ;;  %s29_s14 = int_to_ptr.hbm [resolvable:$true] %s28_s14 }
   0x3   :  { %s30_s16 = sshll.u32 %s409_s15, 4  ;;  %s15_s19 = sshll.u32 %s482_s0, 4  ;;  %s31_s16 = int_to_ptr.vmem [resolvable:$true] %s30_s16  ;;  %s16_s19 = int_to_ptr.hbm [resolvable:$true] %s15_s19 }
   0x4   :  { %s410_s20 = smov 128   ;;  %s411_s21 = smov 8  }
   0x5   :  { %36 = dma.hbm_to_vmem [thread:$0]  %s29_s14, 2048, %s31_s16, [#allocation6], %s410_s20, %s410_s20, %s411_s21  }
   0x6   :  { %s412_s22 = smov [#allocation2]   ;;  %s41_s1 = sshll.u32 %s484_s2, 4  ;;  %s42_s1 = int_to_ptr.hbm [resolvable:$true] %s41_s1 }
   0x7   :  { %s17_s23 = sshll.u32 %s412_s22, 4  ;;  %s413_s0 = smov [#allocation7]   ;;  %s18_s23 = int_to_ptr.vmem [resolvable:$true] %s17_s23 }
   0x8   :  { %23 = dma.hbm_to_vmem [thread:$0]  %s16_s19, 512, %s18_s23, [#allocation3], %s410_s20, %s410_s20, %s411_s21  }
   0x9   :  { %s43_s26 = sshll.u32 %s413_s0, 4  ;;  %s414_s27 = smov 16   ;;  %s44_s26 = int_to_ptr.vmem [resolvable:$true] %s43_s26 }
   0xa   :  { %s415_s28 = smov 1  }
   0xb   :  { %49 = dma.hbm_to_vmem [thread:$0]  %s42_s1, 64, %s44_s26, [#allocation6], %s414_s27, %s414_s27, %s415_s28  }
   0xc   :  { %403 = dma.done.wait [#allocation3], 512  }
   0xd   :  { %404 = vsyncadd [#allocation3], 4294966784 }
   0xe   :  { %405 = dma.done.wait [#allocation6], 2112  }
   0xf   :  { %406 = vsyncadd [#allocation6], 4294965184  ;;  %vm71_vm0 = vcmask 261120   ;;  %v163_v0 = vld [vmem:[#allocation5 + $0x58] sm:$0xff]  ;;  %v162_v4 = vld [vmem:[#allocation5 + $0x50] sm:$0xff]  ;;  %s416_s2 = smov [#allocation8]  }
  0x10   :  { %v212_v1 = vld [vmem:[#allocation5 + $0x78] sm:$0xff]  ;;  %285 = vmatpush.xpose.msk.msra.mxu2 %vm71_vm0, %v163_v0  ;;  %v211_v5 = vld [vmem:[#allocation5 + $0x70] sm:$0xff]  ;;  %v161_v8 = vld [vmem:[#allocation5 + $0x48] sm:$0xff]  ;;  %s259_s29 = sshll.u32 %s416_s2, 4  ;;  %s261_s5 = sshll.u32 %s485_s3, 4  ;;  %s260_s29 = int_to_ptr.vmem [resolvable:$true] %s259_s29  ;;  %s262_s5 = int_to_ptr.hbm [resolvable:$true] %s261_s5 }
  0x11   :  { %290 = vmatpush.xpose.msk.msra.mxu3 %vm71_vm0, %v212_v1  ;;  %v66_v2 = vld [vmem:[#allocation5 + $0x18] sm:$0xff]  ;;  %v65_v6 = vld [vmem:[#allocation5 + $0x10] sm:$0xff]  ;;  %v210_v9 = vld [vmem:[#allocation5 + $0x68] sm:$0xff] }
  0x12   :  { %v114_v3 = vld [vmem:[#allocation5 + $0x38] sm:$0xff]  ;;  %275 = vmatpush.xpose.msk.msra.mxu0 %vm71_vm0, %v66_v2  ;;  %v113_v7 = vld [vmem:[#allocation5 + $0x30] sm:$0xff]  ;;  %v64_v10 = vld [vmem:[#allocation5 + $0x8] sm:$0xff] }
  0x13   :  { %280 = vmatpush.xpose.msk.msra.mxu1 %vm71_vm0, %v114_v3  ;;  %v112_v11 = vld [vmem:[#allocation5 + $0x28] sm:$0xff]  ;;  %v160_v12 = vld [vmem:[#allocation5 + $0x40] sm:$0xff]  ;;  %v158_v16 = vld [vmem:[#allocation2 + $0x10] sm:$0xff] }
  0x14   :  { %286 = vmatpush.xpose.msk.msra.mxu2 %vm71_vm0, %v162_v4  ;;  %v209_v13 = vld [vmem:[#allocation5 + $0x60] sm:$0xff]  ;;  %v207_v17 = vld [vmem:[#allocation2 + $0x18] sm:$0xff]  ;;  %v109_v19 = vld [vmem:[#allocation2 + $0x8] sm:$0xff] }
  0x15   :  { %291 = vmatpush.xpose.msk.msra.mxu3 %vm71_vm0, %v211_v5  ;;  %v63_v14 = vld [vmem:[#allocation5] sm:$0xff] }
  0x16   :  { %276 = vmatpush.xpose.msk.msra.mxu0 %vm71_vm0, %v65_v6  ;;  %v111_v15 = vld [vmem:[#allocation5 + $0x20] sm:$0xff] }
  0x17   :  { %281 = vmatpush.xpose.msk.msra.mxu1 %vm71_vm0, %v113_v7  ;;  %v62_v18 = vld [vmem:[#allocation2] sm:$0xff] }
  0x18   :  { %287 = vmatpush.xpose.msk.msra.mxu2 %vm71_vm0, %v161_v8  ;;  %v303_v20 = vld [vmem:[#allocation7] ss:$0 sm:$0xff]  ;;  %v304_v21 = vld [vmem:[#allocation7 + $0x1] ss:$0 sm:$0xff]  ;;  %v305_v26 = vld [vmem:[#allocation7 + $0x2] ss:$0 sm:$0xff] }
  0x19   :  { %292 = vmatpush.xpose.msk.msra.mxu3 %vm71_vm0, %v210_v9  ;;  %v306_v27 = vld [vmem:[#allocation7 + $0x3] ss:$0 sm:$0xff] }
  0x1a   :  { %277 = vmatpush.xpose.msk.msra.mxu0 %vm71_vm0, %v64_v10 }
  0x1b   :  { %282 = vmatpush.xpose.msk.msra.mxu1 %vm71_vm0, %v112_v11 }
  0x1c   :  { %288 = vmatpush.xpose.msk.msra.mxu2 %vm71_vm0, %v160_v12 }
  0x1d   :  { %293 = vmatpush.xpose.msk.msra.mxu3 %vm71_vm0, %v209_v13 }
  0x1e   :  { %278 = vmatpush.xpose.msk.msra.mxu0 %vm71_vm0, %v63_v14 }
  0x1f   :  { %283 = vmatpush.xpose.msk.msra.mxu1 %vm71_vm0, %v111_v15  ;;  %289 = vmatmul.msk.f32.vlgmr.msra.gmra.mxu2 %vm71_vm0, %v158_v16 }
  0x20   :  { %294 = vmatmul.msk.f32.vlgmr.msra.gmra.mxu3 %vm71_vm0, %v207_v17 }
  0x21   :  { %279 = vmatmul.msk.f32.vlgmr.msra.gmra.mxu0 %vm71_vm0, %v62_v18 }
  0x22   :  { %284 = vmatmul.msk.f32.vlgmr.msra.gmra.mxu1 %vm71_vm0, %v109_v19 }
  0x9e   :  { %v104_v22 = vpop.f32.mrf.mxu0 }
  0x9f   :  { %v152_v23 = vpop.f32.mrf.mxu1  ;;  %v105_v24 = vadd.f32 %v303_v20, %v104_v22 }
  0xa0   :  { %v153_v25 = vadd.f32 %v304_v21, %v152_v23 }
  0xa1   :  { %107 = vst.msk [vmem:[#allocation8] sm:$0xff] %vm71_vm0, %v105_v24 }
  0xa2   :  { %156 = vst.msk [vmem:[#allocation8 + $0x8] sm:$0xff] %vm71_vm0, %v153_v25  ;;  %v201_v28 = vpop.f32.mrf.mxu2 }
  0xa3   :  { %v250_v29 = vpop.f32.mrf.mxu3  ;;  %v202_v30 = vadd.f32 %v305_v26, %v201_v28 }
  0xa4   :  { %v251_v31 = vadd.f32 %v306_v27, %v250_v29 }
  0xa5   :  { %205 = vst.msk [vmem:[#allocation8 + $0x10] sm:$0xff] %vm71_vm0, %v202_v30 }
  0xa6   :  { %254 = vst.msk [vmem:[#allocation8 + $0x18] sm:$0xff] %vm71_vm0, %v251_v31 }
  0xa7   :  { %267 = dma.vmem_to_hbm [thread:$0]  %s260_s29, 512, %s262_s5, [#allocation4], %s410_s20, %s410_s20, %s411_s21  }
  0xa8   :  { %407 = dma.done.wait [#allocation4], 512  }
  0xa9   :  { %408 = vsyncadd [#allocation4], 4294966784 }
  0xaa   :  { %272 = vsyncpa [#allocation3], 1 }
  0xab   :  { %273 = vsyncpa [#allocation6], 1 }
  0xac   :  { %274 = vsyncpa [#allocation4], 1 }

</bundles_post_ra>
